<compile_context>
chip_gen: v5e
topology: v5e:2x2
jax: 0.10.0
libtpu: 0.0.40
codegen_flags: <defaults>
</compile_context>

<pallas_src>
import functools

import jax
import jax.numpy as jnp
from jax.experimental import pallas as pl
from jax.experimental.pallas import tpu as pltpu


def _round_up(x, m):
    return ((x + m - 1) // m) * m


def _sublane_multiple(itemsize):
    # Native sublane tile: 8 rows for 4-byte, 16 for 2-byte, 32 for 1-byte dtypes.
    return max(8, 32 // max(1, itemsize))


def _num_tensorcores():
    """2 on v7x (two TensorCores per chip), 1 on v5e/v6e."""
    try:
        kind = jax.devices()[0].device_kind.lower()
    except Exception:
        return 1
    return 2 if ("v7" in kind or "7x" in kind) else 1


def _vmem_budget_bytes():
    """Conservative VMEM cap: <= 48 MiB and <= 75% of the chip's per-core VMEM."""
    budget = 48 * 1024 * 1024
    try:
        capacity = int(pltpu.get_tpu_info().vmem_capacity_bytes)
        budget = min(budget, (capacity * 3) // 4)
    except Exception:
        pass
    return budget


def _pick_tile_rows(batch, num_classes, itemsize, max_tile_rows=None):
    """Batch-tile rows sized from the padded-VMEM byte budget (no fixed row cap)."""
    sub = _sublane_multiple(itemsize)
    pad_c = _round_up(num_classes, 128)
    # Padded per-row VMEM footprint: logits row (C padded to 128 lanes) plus
    # the (TB, 1) i32 labels row (padded to 128 lanes = 512 B).
    row_bytes = pad_c * itemsize + 128 * 4
    target_bytes = 12 * 1024 * 1024          # per pipeline step (double-buffered x2)
    cap = max(sub, (target_bytes // row_bytes) // sub * sub)
    tb = min(_round_up(batch, sub), cap)
    if max_tile_rows is not None:
        tb = min(tb, max(sub, _round_up(int(max_tile_rows), sub)))
    return max(sub, tb)


def _cls_loss_kernel(logits_ref, labels_ref, out_ref, *, label_smoothing, batch,
                     tile_rows, tiles_per_split, tiles_total, gate_overflow):
    """One (TB, C) batch tile of cross-entropy, accumulated per split.

    logits_ref : (TB, C) input-dtype VMEM
    labels_ref : (TB, 1) i32 VMEM
    out_ref    : (1, 8, 128) f32 VMEM -- resident per-split accumulator
                 (scalar partial sum broadcast over the block)
    """
    s = pl.program_id(0)
    i = pl.program_id(1)

    @pl.when(i == 0)
    def _init():
        out_ref[...] = jnp.zeros_like(out_ref)

    tile_idx = s * tiles_per_split + i

    def _body():
        raw = logits_ref[...]                       # native dtype (bf16 stays bf16)
        labels = labels_ref[...]                    # (TB, 1) i32
        TB, C = raw.shape

        logits = raw.astype(jnp.float32)            # in-kernel cast
        row_max = jnp.max(logits, axis=-1, keepdims=True)          # (TB, 1)
        shifted = logits - row_max                                  # (TB, C)
        lse = jnp.log(jnp.sum(jnp.exp(shifted), axis=-1, keepdims=True))

        # Label pick via select on the raw logits: no one-hot cast, no multiply,
        # and the select+sum run at the packed native-dtype rate.  Exact because
        # only one element per row survives the masked sum.
        col = jax.lax.broadcasted_iota(jnp.int32, (TB, C), 1)
        tgt = (jnp.sum(jnp.where(col == labels, raw, jnp.zeros((), raw.dtype)),
                       axis=-1, keepdims=True).astype(jnp.float32) - row_max)
        nll = lse - tgt                                             # (TB, 1)

        if label_smoothing > 0:
            eps = jnp.float32(label_smoothing)
            # mean_c(-logp) = lse - mean_c(shifted)
            uniform = lse - jnp.sum(shifted, axis=-1, keepdims=True) / jnp.float32(C)
            per_sample = (jnp.float32(1.0) - eps) * nll + eps * uniform
        else:
            per_sample = nll

        # Mask out-of-range rows of the ragged tail tile.  jnp.where is a
        # select (non-NaN-propagating), so garbage rows contribute exactly 0.
        row_ids = tile_idx * tile_rows + jax.lax.broadcasted_iota(jnp.int32, (TB, 1), 0)
        per_sample = jnp.where(row_ids < batch, per_sample, jnp.float32(0.0))

        out_ref[...] = out_ref[...] + jnp.sum(per_sample)   # broadcast over (1,8,128)

    if gate_overflow:
        # Skip compute on the clamped duplicate tile of an uneven 2-core split.
        pl.when(tile_idx < tiles_total)(_body)
    else:
        _body()


def cls_loss_pallas(cls_logit, cls_label, label_smoothing=0.0, *, max_tile_rows=None):
    """Pallas-backed equivalent of ClsLoss.forward on unpacked tensors."""
    B, C = cls_logit.shape
    itemsize = jnp.dtype(cls_logit.dtype).itemsize
    labels2d = cls_label.astype(jnp.int32).reshape(B, 1)

    TB = _pick_tile_rows(B, C, itemsize, max_tile_rows)
    tiles_total = pl.cdiv(B, TB)

    # v7x has two TensorCores: shard the batch-tile loop across them with
    # CORE_PARALLEL.  v5e/v6e (1 TC) skip the split and the duplicate tile.
    nsplit = 2 if (tiles_total > 1 and _num_tensorcores() > 1) else 1
    tiles_per_split = pl.cdiv(tiles_total, nsplit)
    gate_overflow = nsplit * tiles_per_split > tiles_total
    last_tile = tiles_total - 1

    def in_map(s, i):
        # Clamp the (at most one) over-provisioned split tile into range; its
        # compute is skipped in-kernel and its rows are masked anyway.
        return (jnp.minimum(s * tiles_per_split + i, last_tile), 0)

    kernel = functools.partial(
        _cls_loss_kernel,
        label_smoothing=float(label_smoothing),
        batch=B,
        tile_rows=TB,
        tiles_per_split=tiles_per_split,
        tiles_total=tiles_total,
        gate_overflow=gate_overflow,
    )

    # VMEM accounting with lane padding, double-buffered inputs + headroom.
    pad_c = _round_up(C, 128)
    logits_block = TB * pad_c * itemsize
    labels_block = TB * 128 * 4
    out_block = 8 * 128 * 4
    needed = 2 * (logits_block + labels_block) + 2 * out_block + (4 << 20)
    vmem_limit = int(min(_vmem_budget_bytes(), max(16 << 20, needed)))

    cost = pl.CostEstimate(
        flops=7 * B * C,
        transcendentals=B * C + B,
        bytes_accessed=B * C * itemsize + B * 4 + nsplit * 8 * 128 * 4,
    )

    if nsplit == 2:
        dim_sem = (pltpu.CORE_PARALLEL, pltpu.ARBITRARY)
    else:
        dim_sem = ("arbitrary", "arbitrary")

    out = pl.pallas_call(
        kernel,
        out_shape=jax.ShapeDtypeStruct((nsplit, 8, 128), jnp.float32),
        grid_spec=pltpu.PrefetchScalarGridSpec(
            num_scalar_prefetch=0,
            grid=(nsplit, tiles_per_split),
            in_specs=[
                pl.BlockSpec((TB, C), in_map),     # logits tile (native dtype)
                pl.BlockSpec((TB, 1), in_map),     # labels tile
            ],
            out_specs=pl.BlockSpec((1, 8, 128), lambda s, i: (s, 0, 0)),
        ),
        compiler_params=pltpu.CompilerParams(
            dimension_semantics=dim_sem,
            vmem_limit_bytes=vmem_limit,
        ),
        cost_estimate=cost,
    )(cls_logit, labels2d)

    # Each split's (8,128) block holds its partial sum broadcast over the block.
    # Plain-f32 partial-sum accumulation can drift ~1e-6 vs a fused mean for
    # very large B -- acceptable for a scalar loss.
    return jnp.sum(out[:, 0, 0]) / jnp.float32(B)


class ClsLossPallas:
    """Mirrors shaper.models.loss.ClsLoss (dict-in / dict-out interface)."""

    def __init__(self, label_smoothing=0):
        self.label_smoothing = label_smoothing

    def __call__(self, preds, labels):
        cls_logit = preds["cls_logit"]
        cls_label = labels["gt_class_label"]
        cls_loss = cls_loss_pallas(cls_logit, cls_label, self.label_smoothing)
        return {"cls_loss": cls_loss}


def _reference_loss(cls_logit, cls_label, label_smoothing):
    """Pure-JAX reference matching F.cross_entropy / smooth_cross_entropy."""
    logp = jax.nn.log_softmax(cls_logit.astype(jnp.float32), axis=-1)
    B, C = cls_logit.shape
    onehot = jax.nn.one_hot(cls_label, C, dtype=jnp.float32)
    if label_smoothing > 0:
        target = onehot * (1.0 - label_smoothing) + label_smoothing / C
    else:
        target = onehot
    return jnp.mean(jnp.sum(-target * logp, axis=-1))


if __name__ == "__main__":
    key = jax.random.PRNGKey(0)
    k1, k2, k3, k4, k5, k6 = jax.random.split(key, 6)
    ok = True

    # Case 1: small shapes consistent with the module (batch=8, 16 classes).
    B, C = 8, 16
    cls_logit = jax.random.normal(k1, (B, C), dtype=jnp.float32)
    gt_class_label = jax.random.randint(k2, (B,), 0, C, dtype=jnp.int32)
    preds = {"cls_logit": cls_logit}
    labels = {"gt_class_label": gt_class_label}
    for smoothing in (0.0, 0.1):
        loss_fn = ClsLossPallas(label_smoothing=smoothing)
        loss = jax.block_until_ready(loss_fn(preds, labels)["cls_loss"])
        ref = _reference_loss(cls_logit, gt_class_label, smoothing)
        ok = ok and bool(jnp.allclose(loss, ref, rtol=1e-5, atol=1e-5))

    # Case 2: multi-tile grid + ragged tail (row-masking path; on v7x this also
    # exercises the CORE_PARALLEL split and the clamped over-provisioned tile).
    B2, C2 = 40, 16
    logit2 = jax.random.normal(k3, (B2, C2), dtype=jnp.float32)
    label2 = jax.random.randint(k4, (B2,), 0, C2, dtype=jnp.int32)
    for smoothing in (0.0, 0.1):
        loss2 = jax.block_until_ready(
            cls_loss_pallas(logit2, label2, smoothing, max_tile_rows=16))
        ref2 = _reference_loss(logit2, label2, smoothing)
        ok = ok and bool(jnp.allclose(loss2, ref2, rtol=1e-5, atol=1e-5))

    # Case 3: bf16 logits (in-kernel cast, 16-row sublane tile, raw-dtype select).
    B3, C3 = 32, 16
    logit3 = jax.random.normal(k5, (B3, C3), dtype=jnp.bfloat16)
    label3 = jax.random.randint(k6, (B3,), 0, C3, dtype=jnp.int32)
    loss3 = jax.block_until_ready(cls_loss_pallas(logit3, label3, 0.1))
    ref3 = _reference_loss(logit3, label3, 0.1)
    ok = ok and bool(jnp.allclose(loss3, ref3, rtol=1e-4, atol=1e-4))

    if ok:
        print("KERNEL_OK")
</pallas_src>

<mosaic_0001>
module attributes {stable_mosaic.version = 11 : i64} {
  func.func @_cls_loss_kernel(%arg0: i32, %arg1: i32, %arg2: memref<8x16xf32, #tpu.memory_space<vmem>>, %arg3: memref<8x1xi32, #tpu.memory_space<vmem>>, %arg4: memref<1x8x128xf32, #tpu.memory_space<vmem>>) attributes {dimension_semantics = [#tpu.dimension_semantics<arbitrary>, #tpu.dimension_semantics<arbitrary>], iteration_bounds = array<i64: 1, 1>, scalar_prefetch = 0 : i64, scratch_operands = 0 : i64, tpu.core_type = #tpu.core_type<tc>, window_params = [{transform_indices = @transform_0, window_bounds = array<i64: 8, 16>}, {transform_indices = @transform_1, window_bounds = array<i64: 8, 1>}, {transform_indices = @transform_2, window_bounds = array<i64: 1, 8, 128>}]} {
    %c0_i32 = arith.constant 0 : i32
    %0 = arith.cmpi eq, %arg1, %c0_i32 : i32
    %1 = arith.extui %0 : i1 to i32
    %c0_i32_0 = arith.constant 0 : i32
    %2 = arith.cmpi ne, %1, %c0_i32_0 : i32
    scf.if %2 {
      %cst_16 = arith.constant 0.000000e+00 : f32
      %40 = vector.broadcast %cst_16 : f32 to vector<1x8x128xf32>
      %c0_17 = arith.constant 0 : index
      %c0_18 = arith.constant 0 : index
      %c0_19 = arith.constant 0 : index
      %41 = vector.load %arg4[%c0_17, %c0_18, %c0_19] : memref<1x8x128xf32, #tpu.memory_space<vmem>>, vector<1x8x128xf32>
      tpu.vector_store %arg4[%c0_17, %c0_18, %c0_19], %40 {strides = array<i32>} : memref<1x8x128xf32, #tpu.memory_space<vmem>>, vector<1x8x128xf32>,
    } else {
    }
    %c1_i32 = arith.constant 1 : i32
    %3 = arith.muli %arg0, %c1_i32 : i32
    %4 = arith.addi %3, %arg1 : i32
    %c0 = arith.constant 0 : index
    %c0_1 = arith.constant 0 : index
    %5 = vector.load %arg2[%c0, %c0_1] : memref<8x16xf32, #tpu.memory_space<vmem>>, vector<8x16xf32>
    %c0_2 = arith.constant 0 : index
    %c0_3 = arith.constant 0 : index
    %6 = vector.load %arg3[%c0_2, %c0_3] : memref<8x1xi32, #tpu.memory_space<vmem>>, vector<8x1xi32>
    %cst = arith.constant dense<0xFF800000> : vector<8xf32>
    %7 = vector.multi_reduction <maximumf>, %5, %cst [1] : vector<8x16xf32> to vector<8xf32>
    %8 = vector.shape_cast %7 : vector<8xf32> to vector<8x1xf32>
    %9 = vector.broadcast %8 : vector<8x1xf32> to vector<8x16xf32>
    %10 = arith.subf %5, %9 : vector<8x16xf32>
    %11 = math.exp %10 : vector<8x16xf32>
    %cst_4 = arith.constant dense<0.000000e+00> : vector<8xf32>
    %12 = vector.multi_reduction <add>, %11, %cst_4 [1] : vector<8x16xf32> to vector<8xf32>
    %13 = vector.shape_cast %12 : vector<8xf32> to vector<8x1xf32>
    %14 = math.log %13 : vector<8x1xf32>
    %15 = tpu.iota {dimensions = array<i32: 1>} : vector<8x16xi32>
    %16 = vector.broadcast %6 : vector<8x1xi32> to vector<8x16xi32>
    %17 = arith.cmpi eq, %15, %16 : vector<8x16xi32>
    %cst_5 = arith.constant 0.000000e+00 : f32
    %18 = vector.broadcast %cst_5 : f32 to vector<8x16xf32>
    %19 = arith.select %17, %5, %18 : vector<8x16xi1>, vector<8x16xf32>
    %cst_6 = arith.constant dense<0.000000e+00> : vector<8xf32>
    %20 = vector.multi_reduction <add>, %19, %cst_6 [1] : vector<8x16xf32> to vector<8xf32>
    %21 = vector.shape_cast %20 : vector<8xf32> to vector<8x1xf32>
    %22 = arith.subf %21, %8 : vector<8x1xf32>
    %23 = arith.subf %14, %22 : vector<8x1xf32>
    %c8_i32 = arith.constant 8 : i32
    %24 = arith.muli %4, %c8_i32 : i32
    %25 = tpu.iota {dimensions = array<i32: 0>} : vector<8x1xi32>
    %26 = vector.broadcast %24 : i32 to vector<8x1xi32>
    %27 = arith.addi %26, %25 : vector<8x1xi32>
    %c8_i32_7 = arith.constant 8 : i32
    %28 = vector.broadcast %c8_i32_7 : i32 to vector<8x1xi32>
    %29 = arith.cmpi slt, %27, %28 : vector<8x1xi32>
    %cst_8 = arith.constant 0.000000e+00 : f32
    %30 = vector.broadcast %cst_8 : f32 to vector<8x1xf32>
    %31 = arith.select %29, %23, %30 : vector<8x1xi1>, vector<8x1xf32>
    %c0_9 = arith.constant 0 : index
    %c0_10 = arith.constant 0 : index
    %c0_11 = arith.constant 0 : index
    %32 = vector.load %arg4[%c0_9, %c0_10, %c0_11] : memref<1x8x128xf32, #tpu.memory_space<vmem>>, vector<1x8x128xf32>
    %33 = vector.shape_cast %31 : vector<8x1xf32> to vector<1x8x1xf32>
    %cst_12 = arith.constant dense<0.000000e+00> : vector<1xf32>
    %34 = vector.multi_reduction <add>, %33, %cst_12 [1, 2] : vector<1x8x1xf32> to vector<1xf32>
    %35 = vector.shape_cast %34 : vector<1xf32> to vector<1x1x1xf32>
    %36 = vector.extract %35[0, 0, 0] : f32 from vector<1x1x1xf32>
    %37 = vector.broadcast %36 : f32 to vector<1x8x128xf32>
    %38 = arith.addf %32, %37 : vector<1x8x128xf32>
    %c0_13 = arith.constant 0 : index
    %c0_14 = arith.constant 0 : index
    %c0_15 = arith.constant 0 : index
    %39 = vector.load %arg4[%c0_13, %c0_14, %c0_15] : memref<1x8x128xf32, #tpu.memory_space<vmem>>, vector<1x8x128xf32>
    tpu.vector_store %arg4[%c0_13, %c0_14, %c0_15], %38 {strides = array<i32>} : memref<1x8x128xf32, #tpu.memory_space<vmem>>, vector<1x8x128xf32>,
    return
  }
  func.func @transform_0(%arg0: i32, %arg1: i32) -> (i32, i32) {
    %c1_i32 = arith.constant 1 : i32
    %0 = arith.muli %arg0, %c1_i32 : i32
    %1 = arith.addi %0, %arg1 : i32
    %c0_i32 = arith.constant 0 : i32
    %2 = arith.minsi %1, %c0_i32 : i32
    %c0_i32_0 = arith.constant 0 : i32
    %c0_i32_1 = arith.constant 0 : i32
    return %2, %c0_i32_0 : i32, i32
  }
  func.func @transform_1(%arg0: i32, %arg1: i32) -> (i32, i32) {
    %c1_i32 = arith.constant 1 : i32
    %0 = arith.muli %arg0, %c1_i32 : i32
    %1 = arith.addi %0, %arg1 : i32
    %c0_i32 = arith.constant 0 : i32
    %2 = arith.minsi %1, %c0_i32 : i32
    %c0_i32_0 = arith.constant 0 : i32
    %c0_i32_1 = arith.constant 0 : i32
    return %2, %c0_i32_0 : i32, i32
  }
  func.func @transform_2(%arg0: i32, %arg1: i32) -> (i32, i32, i32) {
    %c0_i32 = arith.constant 0 : i32
    %c0_i32_0 = arith.constant 0 : i32
    %c0_i32_1 = arith.constant 0 : i32
    return %arg0, %c0_i32, %c0_i32_0 : i32, i32, i32
  }
}

</mosaic_0001>

<bundles_post_ra>
// kernel: tpu_custom_call.1
= control target key start
LH: loop header
LB: loop body
LE: loop exit
PB: predicated region body
PF: predicated region fallthrough
CT: control target
= control target key end

     0   :  { %vm74_vm0 = vcmask 130048   ;;  %s213_s0 = inlined_call_operand.vmem [shape: f32[8,16], index: 0, kind: input, shape index: {}]   ;;  %s214_s1 = inlined_call_operand.vmem [shape: s32[8,1], index: 1, kind: input, shape index: {}]   ;;  %s215_s2 = inlined_call_operand.hbm [shape: f32[1,8,128], index: 2, kind: output, shape index: {}]  }
   0x1   :  { %v72_v0 = vld [vmem:[%s213_s0] sm:$0xff] }
   0x2   :  { %7 = vsyncpa [#allocation3], 0  ;;  %v75_v1 = vsel %vm74_vm0, %v72_v0, -inf  ;;  %v184_v2 = vmov 0   ;;  %v73_v3 = vld [vmem:[%s214_s1] sm:$0xff]  ;;  %v86_v9 = vlaneseq  ;;  %vm106_vm2 = vcmask 7168  }
   0x3   :  { %153 = vset.pattern.permute.xlu0 %v184_v2  ;;  %s185_s0 = smov [#allocation2]   ;;  %s127_s15 = sshll.u32 %s215_s2, 4  ;;  %s128_s15 = int_to_ptr.hbm [resolvable:$true] %s127_s15 }
   0x4   :  { %76 = vmax.xlane.f32.xlu0 %v75_v1  ;;  %v87_v10 = vand.u32 127, %v86_v9  ;;  %s125_s1 = sshll.u32 %s185_s0, 4  ;;  %s126_s1 = int_to_ptr.vmem [resolvable:$true] %s125_s1 }
  0x18   :  { %89 = vperm.xlu0 %153, %v73_v3  }
  0x77   :  { %v77_v4 = vpop.xlane.xlu0 %76 }
  0x78   :  { %v78_v5 = vsub.f32 %v72_v0, %v77_v4 }
  0x7a   :  { %v79_v6 = vmul.f32 1.442695, %v78_v5 }
  0x7c   :  { %154 = vpow2.f32 %v79_v6 }
  0x82   :  { %v155_v7 = vpop.eup %154 }
  0x83   :  { %v81_v8 = vsel %vm74_vm0, %v155_v7, 0.0 }
  0x84   :  { %82 = vadd.xlane.f32.xlu1 %v81_v8 }
  0x8a   :  { %v90_v11 = vpop.permute.xlu0 %89 }
  0x8b   :  { %vm91_vm1 = vcmp.eq.s32.totalorder %v87_v10, %v90_v11 }
  0x8c   :  { %v92_v12 = vsel %vm91_vm1, %v72_v0, 0.0 }
  0x8d   :  { %v93_v13 = vsel %vm74_vm0, %v92_v12, 0.0 }
  0x8e   :  { %94 = vadd.xlane.f32.xlu1 %v93_v13 }
  0xf7   :  { %v83_v14 = vpop.xlane.xlu1 %82 }
  0xf8   :  { %156 = vlog2.f32 %v83_v14 }
  0xfe   :  { %v157_v15 = vpop.eup %156 }
  0xff   :  { %v85_v17 = vmul.f32 0.6931472, %v157_v15 }
 0x101   :  { %v95_v16 = vpop.xlane.xlu1 %94 }
 0x102   :  { %v96_v18 = vsub.f32 %v95_v16, %v77_v4 }
 0x104   :  { %v97_v19 = vsub.f32 %v85_v17, %v96_v18 }
 0x106   :  { %v107_v20 = vsel %vm106_vm2, %v97_v19, 0.0 }
 0x107   :  { %108 = vadd.xlane.f32.xlu2 %v107_v20 }
 0x17a   :  { %v109_v21 = vpop.xlane.xlu2 %108 }
 0x17b   :  { %v110_v22 = vrot.slane %v109_v21, 4 }
 0x17d   :  { %v111_v23 = vadd.f32 %v110_v22, %v109_v21 }
 0x17f   :  { %v112_v24 = vrot.slane %v111_v23, 2 }
 0x181   :  { %v113_v25 = vadd.f32 %v112_v24, %v111_v23 }
 0x183   :  { %v114_v26 = vrot.slane %v113_v25, 1 }
 0x185   :  { %v115_v27 = vadd.f32 %v114_v26, %v113_v25 }
 0x187   :  { %148 = vpush %v115_v27 }
 0x1b8   :  { %s149_s16 = spop %148 }
 0x1b9   :  { %v117_v28 = vstv %s149_s16 }
 0x1ba   :  { %119 = vst [vmem:[#allocation2] sm:$0xff] %v117_v28 }
 0x1bb   :  { %130 = dma.vmem_to_hbm [thread:$0]  %s126_s1, 128, %s128_s15, [#allocation3]  }
 0x1bc   :  { %182 = dma.done.wait [#allocation3], 128  }
 0x1bd   :  { %183 = vsyncadd [#allocation3], 4294967168 }
 0x1be   :  { %135 = vsyncpa [#allocation3], 1 }

</bundles_post_ra>
